<compile_context>
chip_gen: v6e
topology: v6e:2x2x1
jax: 0.10.0
libtpu: 0.0.40
codegen_flags: <defaults>
</compile_context>

<pallas_src>
import functools
import math

import jax
import jax.numpy as jnp
from jax import lax
from jax.experimental import pallas as pl
from jax.experimental.pallas import tpu as pltpu


def _round_up(x: int, m: int) -> int:
    return (x + m - 1) // m * m


# --------------------------------------------------------------------------
# Kernels
# --------------------------------------------------------------------------
def _arc_margin_kernel(x_ref, w_ref, inv_xn_ref, inv_wn_ref, label_ref, out_ref,
                       *, scale, cos_m, sin_m, th, mm, tile_c):
    # Normalize rows (reciprocal norms precomputed in the wrapper), feed the
    # MXU bf16 operands with f32 accumulation.
    xn = (x_ref[...] * inv_xn_ref[...]).astype(jnp.bfloat16)     # (TB, D)
    wn = (w_ref[...] * inv_wn_ref[...]).astype(jnp.bfloat16)     # (TC, D)

    # cosine = xn @ wn^T without materializing a transpose: contract last dims.
    cosine = lax.dot_general(
        xn, wn, dimension_numbers=(((1,), (1,)), ((), ())),
        preferred_element_type=jnp.float32)                      # (TB, TC)

    # ArcFace margin (clamp 1 - cos^2 to avoid NaN from fp rounding).
    sine = jnp.sqrt(jnp.maximum(1.0 - cosine * cosine, 0.0))
    phi = cosine * cos_m - sine * sin_m
    phi = jnp.where(cosine > th, phi, cosine - mm)

    # one_hot via global column ids (offset by this class tile).
    tb, tc = out_ref.shape
    col0 = pl.program_id(1) * tile_c
    col_ids = col0 + lax.broadcasted_iota(jnp.int32, (tb, tc), 1)
    one_hot = col_ids == label_ref[...]                          # (TB,1) broadcasts

    out_ref[...] = jnp.where(one_hot, phi, cosine) * scale


def _cosine_kernel(x_ref, w_ref, inv_xn_ref, inv_wn_ref, out_ref):
    xn = (x_ref[...] * inv_xn_ref[...]).astype(jnp.bfloat16)
    wn = (w_ref[...] * inv_wn_ref[...]).astype(jnp.bfloat16)
    out_ref[...] = lax.dot_general(
        xn, wn, dimension_numbers=(((1,), (1,)), ((), ())),
        preferred_element_type=jnp.float32)


# --------------------------------------------------------------------------
# Module
# --------------------------------------------------------------------------
class ArcMarginProduct:
    """JAX/Pallas re-implementation of the PyTorch ArcMarginProduct module."""

    # Tile caps: modest enough to fit v7x's 64 MiB VMEM with double buffering
    # and the fused (TB, TC) f32 epilogue temporaries.
    MAX_TB = 256
    MAX_TC = 512

    def __init__(self, in_features: int, out_features: int,
                 scale: float = 30.0, margin: float = 0.5,
                 key: jax.Array | None = None):
        self.in_features = in_features
        self.out_features = out_features
        self.scale = scale
        self.margin = margin
        self.cos_m = math.cos(margin)
        self.sin_m = math.sin(margin)
        self.th = math.cos(math.pi - margin)
        self.mm = math.sin(math.pi - margin) * margin

        if key is None:
            key = jax.random.PRNGKey(0)
        # nn.init.xavier_uniform_ on a (out_features, in_features) matrix
        bound = math.sqrt(6.0 / (in_features + out_features))
        self.weight = jax.random.uniform(
            key, (out_features, in_features), jnp.float32, -bound, bound)

    def __call__(self, x: jax.Array, label: jax.Array | None = None) -> jax.Array:
        B, D = x.shape
        C = self.out_features
        assert D == self.in_features

        # ---- tiling / padding (MXU-friendly: lanes multiple of 128, sublanes of 8)
        TB = min(self.MAX_TB, _round_up(B, 8))
        TC = min(self.MAX_TC, _round_up(C, 128))
        Bp = _round_up(B, TB)
        Cp = _round_up(C, TC)
        Dp = _round_up(D, 128)

        xp = jnp.pad(x.astype(jnp.float32), ((0, Bp - B), (0, Dp - D)))
        wp = jnp.pad(self.weight.astype(jnp.float32), ((0, Cp - C), (0, Dp - D)))

        # F.normalize(dim=1, eps=1e-12): v / max(||v||, eps) == v * rsqrt(max(ss, eps^2))
        eps2 = 1e-24
        inv_xn = lax.rsqrt(jnp.maximum(jnp.sum(xp * xp, axis=-1, keepdims=True), eps2))
        inv_wn = lax.rsqrt(jnp.maximum(jnp.sum(wp * wp, axis=-1, keepdims=True), eps2))

        grid = (Bp // TB, Cp // TC)
        compiler_params = pltpu.CompilerParams(
            dimension_semantics=("parallel", "parallel"),
            vmem_limit_bytes=48 * 1024 * 1024)
        cost = pl.CostEstimate(
            flops=int(2 * Bp * Cp * Dp),
            transcendentals=int(Bp * Cp if label is not None else 0),
            bytes_accessed=int(4 * (Bp * Dp + Cp * Dp + Bp * Cp + Bp + Cp)))

        x_spec = pl.BlockSpec((TB, Dp), lambda i, j: (i, 0))
        w_spec = pl.BlockSpec((TC, Dp), lambda i, j: (j, 0))
        ixn_spec = pl.BlockSpec((TB, 1), lambda i, j: (i, 0))
        iwn_spec = pl.BlockSpec((TC, 1), lambda i, j: (j, 0))
        out_spec = pl.BlockSpec((TB, TC), lambda i, j: (i, j))

        if label is None:
            out = pl.pallas_call(
                _cosine_kernel,
                out_shape=jax.ShapeDtypeStruct((Bp, Cp), jnp.float32),
                grid=grid,
                in_specs=[x_spec, w_spec, ixn_spec, iwn_spec],
                out_specs=out_spec,
                compiler_params=compiler_params,
                cost_estimate=cost,
            )(xp, wp, inv_xn, inv_wn)
            return out[:B, :C]

        label_col = jnp.pad(label.astype(jnp.int32).reshape(B, 1),
                            ((0, Bp - B), (0, 0)), constant_values=-1)
        label_spec = pl.BlockSpec((TB, 1), lambda i, j: (i, 0))

        kernel = functools.partial(
            _arc_margin_kernel,
            scale=self.scale, cos_m=self.cos_m, sin_m=self.sin_m,
            th=self.th, mm=self.mm, tile_c=TC)

        out = pl.pallas_call(
            kernel,
            out_shape=jax.ShapeDtypeStruct((Bp, Cp), jnp.float32),
            grid=grid,
            in_specs=[x_spec, w_spec, ixn_spec, iwn_spec, label_spec],
            out_specs=out_spec,
            compiler_params=compiler_params,
            cost_estimate=cost,
        )(xp, wp, inv_xn, inv_wn, label_col)
        return out[:B, :C]


# --------------------------------------------------------------------------
# Pure-JAX reference (mirrors the PyTorch forward) for a loose numeric check.
# --------------------------------------------------------------------------
def _reference_forward(x, weight, label, scale, cos_m, sin_m, th, mm):
    xn = x / jnp.maximum(jnp.linalg.norm(x, axis=1, keepdims=True), 1e-12)
    wn = weight / jnp.maximum(jnp.linalg.norm(weight, axis=1, keepdims=True), 1e-12)
    cosine = xn @ wn.T
    if label is None:
        return cosine
    sine = jnp.sqrt(jnp.clip(1.0 - cosine * cosine, 0.0, None))
    phi = cosine * cos_m - sine * sin_m
    phi = jnp.where(cosine > th, phi, cosine - mm)
    one_hot = jax.nn.one_hot(label, weight.shape[0], dtype=cosine.dtype)
    return (one_hot * phi + (1.0 - one_hot) * cosine) * scale


if __name__ == "__main__":
    key = jax.random.PRNGKey(0)
    k_w, k_x, k_l = jax.random.split(key, 3)

    # Small but multi-class-tile shapes: exercises the tiled one-hot offset
    # and the D/C padding paths (D=64 -> 128, C=1024 -> two 512-wide tiles).
    B, D, C = 8, 64, 1024

    module = ArcMarginProduct(in_features=D, out_features=C,
                              scale=30.0, margin=0.5, key=k_w)

    x = jax.random.normal(k_x, (B, D), dtype=jnp.float32)
    label = jax.random.randint(k_l, (B,), 0, C, dtype=jnp.int32)

    # Labeled (training) path
    logits = jax.block_until_ready(module(x, label))
    # label=None (inference) path returns plain cosine similarities
    cosine = jax.block_until_ready(module(x, None))

    assert logits.shape == (B, C) and cosine.shape == (B, C)
    assert bool(jnp.all(jnp.isfinite(logits))) and bool(jnp.all(jnp.isfinite(cosine)))

    # Loose tolerance: kernel matmul runs with bf16 operands / f32 accumulation.
    ref_logits = _reference_forward(x, module.weight, label, module.scale,
                                    module.cos_m, module.sin_m, module.th, module.mm)
    ref_cosine = _reference_forward(x, module.weight, None, module.scale,
                                    module.cos_m, module.sin_m, module.th, module.mm)
    assert float(jnp.max(jnp.abs(cosine - ref_cosine))) < 0.1
    assert float(jnp.max(jnp.abs(logits - ref_logits))) < 1.0

    print("KERNEL_OK")
</pallas_src>

<mosaic_0001>
module attributes {stable_mosaic.version = 11 : i64} {
  func.func @_arc_margin_kernel(%arg0: i32, %arg1: i32, %arg2: memref<8x128xf32, #tpu.memory_space<vmem>>, %arg3: memref<512x128xf32, #tpu.memory_space<vmem>>, %arg4: memref<8x1xf32, #tpu.memory_space<vmem>>, %arg5: memref<512x1xf32, #tpu.memory_space<vmem>>, %arg6: memref<8x1xi32, #tpu.memory_space<vmem>>, %arg7: memref<8x512xf32, #tpu.memory_space<vmem>>) attributes {dimension_semantics = [#tpu.dimension_semantics<parallel>, #tpu.dimension_semantics<parallel>], iteration_bounds = array<i64: 1, 2>, scalar_prefetch = 0 : i64, scratch_operands = 0 : i64, tpu.core_type = #tpu.core_type<tc>, window_params = [{transform_indices = @transform_0, window_bounds = array<i64: 8, 128>}, {transform_indices = @transform_1, window_bounds = array<i64: 512, 128>}, {transform_indices = @transform_2, window_bounds = array<i64: 8, 1>}, {transform_indices = @transform_3, window_bounds = array<i64: 512, 1>}, {transform_indices = @transform_4, window_bounds = array<i64: 8, 1>}, {transform_indices = @transform_5, window_bounds = array<i64: 8, 512>}]} {
    %c0 = arith.constant 0 : index
    %c0_0 = arith.constant 0 : index
    %0 = vector.load %arg2[%c0, %c0_0] : memref<8x128xf32, #tpu.memory_space<vmem>>, vector<8x128xf32>
    %c0_1 = arith.constant 0 : index
    %c0_2 = arith.constant 0 : index
    %1 = vector.load %arg4[%c0_1, %c0_2] : memref<8x1xf32, #tpu.memory_space<vmem>>, vector<8x1xf32>
    %2 = vector.broadcast %1 : vector<8x1xf32> to vector<8x128xf32>
    %3 = arith.mulf %0, %2 : vector<8x128xf32>
    %4 = arith.truncf %3 : vector<8x128xf32> to vector<8x128xbf16>
    %c0_3 = arith.constant 0 : index
    %c0_4 = arith.constant 0 : index
    %5 = vector.load %arg3[%c0_3, %c0_4] : memref<512x128xf32, #tpu.memory_space<vmem>>, vector<512x128xf32>
    %c0_5 = arith.constant 0 : index
    %c0_6 = arith.constant 0 : index
    %6 = vector.load %arg5[%c0_5, %c0_6] : memref<512x1xf32, #tpu.memory_space<vmem>>, vector<512x1xf32>
    %7 = vector.broadcast %6 : vector<512x1xf32> to vector<512x128xf32>
    %8 = arith.mulf %5, %7 : vector<512x128xf32>
    %9 = arith.truncf %8 : vector<512x128xf32> to vector<512x128xbf16>
    %cst = arith.constant dense<0.000000e+00> : vector<8x512xf32>
    %10 = tpu.matmul %4, %9, %cst {dimension_numbers = #tpu.dot_dimension_numbers<[1], [1], [0], [0], [0, 0, 1, 0], [], []>} : vector<8x128xbf16>, vector<512x128xbf16>, vector<8x512xf32> -> vector<8x512xf32>
    %11 = arith.mulf %10, %10 : vector<8x512xf32>
    %cst_7 = arith.constant 1.000000e+00 : f32
    %12 = vector.broadcast %cst_7 : f32 to vector<8x512xf32>
    %13 = arith.subf %12, %11 : vector<8x512xf32>
    %cst_8 = arith.constant 0.000000e+00 : f32
    %14 = vector.broadcast %cst_8 : f32 to vector<8x512xf32>
    %15 = arith.maximumf %13, %14 : vector<8x512xf32>
    %16 = math.sqrt %15 : vector<8x512xf32>
    %cst_9 = arith.constant 0.87758255 : f32
    %17 = vector.broadcast %cst_9 : f32 to vector<8x512xf32>
    %18 = arith.mulf %10, %17 : vector<8x512xf32>
    %cst_10 = arith.constant 0.47942555 : f32
    %19 = vector.broadcast %cst_10 : f32 to vector<8x512xf32>
    %20 = arith.mulf %16, %19 : vector<8x512xf32>
    %21 = arith.subf %18, %20 : vector<8x512xf32>
    %cst_11 = arith.constant -0.87758255 : f32
    %22 = vector.broadcast %cst_11 : f32 to vector<8x512xf32>
    %23 = arith.cmpf ogt, %10, %22 : vector<8x512xf32>
    %cst_12 = arith.constant 0.239712775 : f32
    %24 = vector.broadcast %cst_12 : f32 to vector<8x512xf32>
    %25 = arith.subf %10, %24 : vector<8x512xf32>
    %26 = arith.select %23, %21, %25 : vector<8x512xi1>, vector<8x512xf32>
    %c512_i32 = arith.constant 512 : i32
    %27 = arith.muli %arg1, %c512_i32 : i32
    %28 = tpu.iota {dimensions = array<i32: 1>} : vector<8x512xi32>
    %29 = vector.broadcast %27 : i32 to vector<8x512xi32>
    %30 = arith.addi %29, %28 : vector<8x512xi32>
    %c0_13 = arith.constant 0 : index
    %c0_14 = arith.constant 0 : index
    %31 = vector.load %arg6[%c0_13, %c0_14] : memref<8x1xi32, #tpu.memory_space<vmem>>, vector<8x1xi32>
    %32 = vector.broadcast %31 : vector<8x1xi32> to vector<8x512xi32>
    %33 = arith.cmpi eq, %30, %32 : vector<8x512xi32>
    %34 = arith.select %33, %26, %10 : vector<8x512xi1>, vector<8x512xf32>
    %cst_15 = arith.constant 3.000000e+01 : f32
    %35 = vector.broadcast %cst_15 : f32 to vector<8x512xf32>
    %36 = arith.mulf %34, %35 : vector<8x512xf32>
    %c0_16 = arith.constant 0 : index
    %c0_17 = arith.constant 0 : index
    %37 = vector.load %arg7[%c0_16, %c0_17] : memref<8x512xf32, #tpu.memory_space<vmem>>, vector<8x512xf32>
    tpu.vector_store %arg7[%c0_16, %c0_17], %36 {strides = array<i32>} : memref<8x512xf32, #tpu.memory_space<vmem>>, vector<8x512xf32>,
    return
  }
  func.func @transform_0(%arg0: i32, %arg1: i32) -> (i32, i32) {
    %c0_i32 = arith.constant 0 : i32
    %c0_i32_0 = arith.constant 0 : i32
    return %arg0, %c0_i32 : i32, i32
  }
  func.func @transform_1(%arg0: i32, %arg1: i32) -> (i32, i32) {
    %c0_i32 = arith.constant 0 : i32
    %c0_i32_0 = arith.constant 0 : i32
    return %arg1, %c0_i32 : i32, i32
  }
  func.func @transform_2(%arg0: i32, %arg1: i32) -> (i32, i32) {
    %c0_i32 = arith.constant 0 : i32
    %c0_i32_0 = arith.constant 0 : i32
    return %arg0, %c0_i32 : i32, i32
  }
  func.func @transform_3(%arg0: i32, %arg1: i32) -> (i32, i32) {
    %c0_i32 = arith.constant 0 : i32
    %c0_i32_0 = arith.constant 0 : i32
    return %arg1, %c0_i32 : i32, i32
  }
  func.func @transform_4(%arg0: i32, %arg1: i32) -> (i32, i32) {
    %c0_i32 = arith.constant 0 : i32
    %c0_i32_0 = arith.constant 0 : i32
    return %arg0, %c0_i32 : i32, i32
  }
  func.func @transform_5(%arg0: i32, %arg1: i32) -> (i32, i32) {
    %c0_i32 = arith.constant 0 : i32
    return %arg0, %arg1 : i32, i32
  }
}

</mosaic_0001>

<bundles_post_ra>
// kernel: tpu_custom_call.1
= control target key start
LH: loop header
LB: loop body
LE: loop exit
PB: predicated region body
PF: predicated region fallthrough
CT: control target
= control target key end

     0   :  { %10 = vsyncpa [#allocation3], 0  ;;  %s1739_s0 = inlined_call_operand.vmem [shape: f32[8,128], index: 0, kind: input, shape index: {}]   ;;  %s1740_s1 = inlined_call_operand.vmem [shape: f32[1024,128], index: 1, kind: input, shape index: {}]   ;;  %s1741_s2 = inlined_call_operand.vmem [shape: f32[8,1], index: 2, kind: input, shape index: {}]   ;;  %s1742_s3 = inlined_call_operand.vmem [shape: f32[1024,1], index: 3, kind: input, shape index: {}]   ;;  %s1743_s4 = inlined_call_operand.vmem [shape: s32[8,1], index: 4, kind: input, shape index: {}]   ;;  %s1744_s5 = inlined_call_operand.hbm [shape: f32[8,1024], index: 5, kind: output, shape index: {}]  }
   0x1   :  { %12 = vsyncpa [#allocation3 + $0x1], 0  ;;  %s1424_s18 = smov 0   ;;  %s1426_s19 = smov 0  }
   0x2   :  { %s1428_s20 = smov 0   ;;  %s1430_s21 = smov 0  }
   0x3   :  { %s1432_s22 = smov 0   ;;  %s1434_s23 = smov 0  }
   0x4 LB: > { %s1188_s24 = sadd.s32 4294967295, %s1390_s23   ;;  %s1189_s25 = sadd.s32 4294967294, %s1390_s23   ;;  %s1390_s23 = sphi %s1434_s23, %s18_s23   ;;  %s1386_s22 = sphi %s1432_s22, %s1751_s22   ;;  %s1382_s21 = sphi %s1430_s21, %s1750_s21   ;;  %s1378_s20 = sphi %s1428_s20, %s1749_s20   ;;  %s1374_s19 = sphi %s1426_s19, %s1748_s19   ;;  %s1370_s18 = sphi %s1424_s18, %s1747_s18  }
   0x5   : > { %s27_s26 = sadd.s32 1, %s1386_s22  ;;  %s169_s27 = sadd.s32 1, %s1378_s20 }
   0x6   : > { %p28_p0 = scmp.ge.s32.totalorder %s27_s26, 2  ;;  %p179_p1 = scmp.ne.s32.totalorder %s1378_s20, %s1374_s19 }
   0x7   : > { %p180_p2 = scmp.eq.s32.totalorder %s1188_s24, 1  ;;  %p185_p3 = scmp.ne.s32.totalorder %s1374_s19, %s1370_s18 }
   0x8   : > { %s1753_s26 = smov (%p28_p0, %s27_s26), 0  ;;  %p186_p5 = scmp.eq.s32.totalorder %s1189_s25, 1 }
   0x9   : > { %p1464_p4 = por %p180_p2, %p179_p1  ;;  %s165_s29 = ssub.s32 %s1386_s22, %s1753_s26 }
   0xa   : > { %p1195_p6 = scmp.ge.s32.totalorder %s1390_s23, 1  ;;  %p167_p7 = scmp.eq.s32.totalorder %s165_s29, 0 }
   0xb   : > { %p1471_p8 = por %p186_p5, %p185_p3  ;;  %p243_p9 = scmp.lt.s32.totalorder %s1390_s23, 3 }
   0xc   : > { %s1477_s6 = scalar_select %p167_p7, %s1378_s20, %s169_s27  }
   0xd   : > { %p244_p10 = pnand %p1195_p6, %p243_p9 }
   0xe   : > { %s1197_s7 = sshll.u32 (!%p244_p10), %s1382_s21, 6  ;;  %s1205_s29 = sshll.u32 (!%p244_p10), %s1382_s21, 9 }
   0xf   : > { %247 = sbr.rel (%p244_p10) target bundleno = 524 (0x20c), region = 40  ;;  %p293_p11 = scmp.lt.s32.totalorder (!%p244_p10), %s1197_s7, 127 }
  0x10   : > { %s1696_s13 = scalar_lea.hbm (!%p244_p10), %s1744_s5, %s1205_s29  ;;  %s1393_s21 = smov (!%p244_p10), [#allocation2]  }
  0x11   : > { %s1318_s16 = sshll.u32 (!%p244_p10), %s1393_s21, 4  ;;  %s1319_s16 = int_to_ptr.vmem [resolvable:$false] %s1318_s16 }
  0x12   : > { %s1320_s17 = scalar_lea.vmem (!%p244_p10), %s1319_s16, 1024 }
  0x14   : > { %v1392_v0 = vmov 0   ;;  %s1755_s7 = smov (!%p293_p11, %s1197_s7), 127 }
  0x15   : > { %1305 = vset.pattern.permute.xlu1 %v1392_v0  ;;  %1304 = vset.pattern.permute.xlu0 %v1392_v0  ;;  %s1198_s8 = sshll.u32 %s1755_s7, 3  ;;  %s285_s7 = sand.u32 1, %s1374_s19  }
  0x16   : > { %s1488_s11 = scalar_lea.vmem %s1742_s3, %s1198_s8  ;;  %s1557_s14 = scalar_lea.vmem %s1740_s1, %s1198_s8 }
  0x17   : > { %v449_v1 = vld [vmem:[%s1488_s11 + $0x1f0] sm:$0xff]  ;;  %v450_v3 = vld [vmem:[%s1488_s11 + $0x1f8] sm:$0xff]  ;;  %v416_v9 = vld [vmem:[%s1488_s11 + $0xe8] sm:$0xff]  ;;  %s1196_s8 = sshll.u32 %s285_s7, 5 }
  0x18   : > { %v417_v2 = vld [vmem:[%s1488_s11 + $0xf0] sm:$0xff]  ;;  %763 = vperm.xlu1 %1305, %v449_v1   ;;  %v418_v4 = vld [vmem:[%s1488_s11 + $0xf8] sm:$0xff]  ;;  %v415_v10 = vld [vmem:[%s1488_s11 + $0xe0] sm:$0xff]  ;;  %s287_s9 = scalar_lea.vmem [#allocation2], %s1196_s8 }
  0x19   : > { %603 = vperm.xlu0 %1304, %v417_v2   ;;  %v402_v5 = vld [vmem:[%s1488_s11 + $0x78] sm:$0xff]  ;;  %v401_v6 = vld [vmem:[%s1488_s11 + $0x70] sm:$0xff]  ;;  %v448_v11 = vld [vmem:[%s1488_s11 + $0x1e8] sm:$0xff]  ;;  %s1061_s10 = sshll.u32 %s287_s9, 4  ;;  %s1062_s10 = int_to_ptr.vmem [resolvable:$true] %s1061_s10 }
  0x1a   : > { %v434_v7 = vld [vmem:[%s1488_s11 + $0x178] sm:$0xff]  ;;  %v433_v8 = vld [vmem:[%s1488_s11 + $0x170] sm:$0xff]  ;;  %v447_v12 = vld [vmem:[%s1488_s11 + $0x1e0] sm:$0xff]  ;;  %s1314_s15 = scalar_lea.vmem %s1062_s10, 512  ;;  %p1321_p1 = scmp.lt.s32.totalorder %s1062_s10, %s1319_s16 }
  0x1b   : > { %v400_v13 = vld [vmem:[%s1488_s11 + $0x68] sm:$0xff]  ;;  %v399_v14 = vld [vmem:[%s1488_s11 + $0x60] sm:$0xff]  ;;  %v414_v17 = vld [vmem:[%s1488_s11 + $0xd8] sm:$0xff]  ;;  %p1315_p12 = scmp.ne.s32.totalorder %s1062_s10, %s1314_s15  ;;  %p1322_p2 = scmp.lt.s32.totalorder %s1320_s17, %s1314_s15 }
  0x1c   : > { %768 = vperm.xlu1 %1305, %v450_v3   ;;  %v432_v15 = vld [vmem:[%s1488_s11 + $0x168] sm:$0xff]  ;;  %v431_v16 = vld [vmem:[%s1488_s11 + $0x160] sm:$0xff]  ;;  %v413_v18 = vld [vmem:[%s1488_s11 + $0xd0] sm:$0xff] }
  0x1d   : > { %608 = vperm.xlu0 %1304, %v418_v4   ;;  %v446_v19 = vld [vmem:[%s1488_s11 + $0x1d8] sm:$0xff]  ;;  %v445_v20 = vld [vmem:[%s1488_s11 + $0x1d0] sm:$0xff]  ;;  %v412_v25 = vld [vmem:[%s1488_s11 + $0xc8] sm:$0xff]  ;;  %p1316_p13 = pnand %p1315_p12, %p1464_p4  ;;  %p1323_p3 = por %p1322_p2, %p1321_p1 }
  0x1e   : > { %v398_v21 = vld [vmem:[%s1488_s11 + $0x58] sm:$0xff]  ;;  %v397_v22 = vld [vmem:[%s1488_s11 + $0x50] sm:$0xff]  ;;  %v411_v26 = vld [vmem:[%s1488_s11 + $0xc0] sm:$0xff] }
  0x1f   : > { %v430_v23 = vld [vmem:[%s1488_s11 + $0x158] sm:$0xff]  ;;  %v429_v24 = vld [vmem:[%s1488_s11 + $0x150] sm:$0xff]  ;;  %v444_v27 = vld [vmem:[%s1488_s11 + $0x1c8] sm:$0xff]  ;;  %p1317_p0 = pneg %p1316_p13 }
  0x20   : > { %528 = vperm.xlu1 %1305, %v402_v5   ;;  %v443_v28 = vld [vmem:[%s1488_s11 + $0x1c0] sm:$0xff]  ;;  %v396_v29 = vld [vmem:[%s1488_s11 + $0x48] sm:$0xff]  ;;  %v410_v33 = vld [vmem:[%s1488_s11 + $0xb8] sm:$0xff] }
  0x21   : > { %523 = vperm.xlu0 %1304, %v401_v6   ;;  %v395_v30 = vld [vmem:[%s1488_s11 + $0x40] sm:$0xff]  ;;  %v428_v31 = vld [vmem:[%s1488_s11 + $0x148] sm:$0xff]  ;;  %v409_v34 = vld [vmem:[%s1488_s11 + $0xb0] sm:$0xff]  ;;  %p1324_p5 = pnand %p1323_p3, %p1317_p0 }
  0x22   : > { %v427_v32 = vld [vmem:[%s1488_s11 + $0x140] sm:$0xff]  ;;  %v442_v35 = vld [vmem:[%s1488_s11 + $0x1b8] sm:$0xff]  ;;  %v441_v36 = vld [vmem:[%s1488_s11 + $0x1b0] sm:$0xff] }
  0x23   : > { %v394_v37 = vld [vmem:[%s1488_s11 + $0x38] sm:$0xff]  ;;  %v393_v38 = vld [vmem:[%s1488_s11 + $0x30] sm:$0xff]  ;;  %v408_v41 = vld [vmem:[%s1488_s11 + $0xa8] sm:$0xff] }
  0x24   : > { %688 = vperm.xlu1 %1305, %v434_v7   ;;  %v426_v39 = vld [vmem:[%s1488_s11 + $0x138] sm:$0xff]  ;;  %v425_v40 = vld [vmem:[%s1488_s11 + $0x130] sm:$0xff]  ;;  %v407_v42 = vld [vmem:[%s1488_s11 + $0xa0] sm:$0xff] }
  0x25   : > { %683 = vperm.xlu0 %1304, %v433_v8   ;;  %v440_v43 = vld [vmem:[%s1488_s11 + $0x1a8] sm:$0xff]  ;;  %v439_v44 = vld [vmem:[%s1488_s11 + $0x1a0] sm:$0xff]  ;;  %v406_v49 = vld [vmem:[%s1488_s11 + $0x98] sm:$0xff] }
  0x26   : > { %v392_v45 = vld [vmem:[%s1488_s11 + $0x28] sm:$0xff]  ;;  %v391_v46 = vld [vmem:[%s1488_s11 + $0x20] sm:$0xff]  ;;  %v405_v50 = vld [vmem:[%s1488_s11 + $0x90] sm:$0xff] }
  0x27   : > { %v424_v47 = vld [vmem:[%s1488_s11 + $0x128] sm:$0xff]  ;;  %v423_v48 = vld [vmem:[%s1488_s11 + $0x120] sm:$0xff]  ;;  %v438_v51 = vld [vmem:[%s1488_s11 + $0x198] sm:$0xff] }
  0x28   : > { %598 = vperm.xlu1 %1305, %v416_v9   ;;  %v437_v52 = vld [vmem:[%s1488_s11 + $0x190] sm:$0xff]  ;;  %v390_v53 = vld [vmem:[%s1488_s11 + $0x18] sm:$0xff]  ;;  %v404_v57 = vld [vmem:[%s1488_s11 + $0x88] sm:$0xff] }
  0x29   : > { %593 = vperm.xlu0 %1304, %v415_v10   ;;  %v389_v54 = vld [vmem:[%s1488_s11 + $0x10] sm:$0xff]  ;;  %v422_v55 = vld [vmem:[%s1488_s11 + $0x118] sm:$0xff]  ;;  %v403_v58 = vld [vmem:[%s1488_s11 + $0x80] sm:$0xff] }
  0x2a   : > { %v421_v56 = vld [vmem:[%s1488_s11 + $0x110] sm:$0xff]  ;;  %v436_v59 = vld [vmem:[%s1488_s11 + $0x188] sm:$0xff]  ;;  %v435_v60 = vld [vmem:[%s1488_s11 + $0x180] sm:$0xff] }
  0x2b   : > { %v388_v61 = vld [vmem:[%s1488_s11 + $0x8] sm:$0xff]  ;;  %v387_v62 = vld [vmem:[%s1488_s11] sm:$0xff]  ;;  %v385_v3 = vld [vmem:[%s1557_s14 + $0x1f0] sm:$0xff] }
  0x2c   : > { %758 = vperm.xlu1 %1305, %v448_v11   ;;  %v420_v63 = vld [vmem:[%s1488_s11 + $0x108] sm:$0xff]  ;;  %v419_v0 = vld [vmem:[%s1488_s11 + $0x100] sm:$0xff]  ;;  %v353_v4 = vld [vmem:[%s1557_s14 + $0xf0] sm:$0xff] }
  0x2d   : > { %753 = vperm.xlu0 %1304, %v447_v12   ;;  %v386_v5 = vld [vmem:[%s1557_s14 + $0x1f8] sm:$0xff]  ;;  %v1024_v7 = vld [vmem:[%s1743_s4] sm:$0xff] }
  0x2e   : > { %v354_v6 = vld [vmem:[%s1557_s14 + $0xf8] sm:$0xff]  ;;  %v315_v8 = vld [vmem:[%s1741_s2] sm:$0xff] }
  0x30   : > { %518 = vperm.xlu1 %1305, %v400_v13  }
  0x31   : > { %513 = vperm.xlu0 %1304, %v399_v14  }
  0x34   : > { %678 = vperm.xlu1 %1305, %v432_v15   ;;  %v338_v15 = vld [vmem:[%s1557_s14 + $0x78] sm:$0xff] }
  0x35   : > { %673 = vperm.xlu0 %1304, %v431_v16   ;;  %v337_v16 = vld [vmem:[%s1557_s14 + $0x70] sm:$0xff] }
  0x38   : > { %588 = vperm.xlu1 %1305, %v414_v17  }
  0x39   : > { %583 = vperm.xlu0 %1304, %v413_v18  }
  0x3c   : > { %748 = vperm.xlu1 %1305, %v446_v19  }
  0x3d   : > { %743 = vperm.xlu0 %1304, %v445_v20  }
  0x40   : > { %508 = vperm.xlu1 %1305, %v398_v21  }
  0x41   : > { %503 = vperm.xlu0 %1304, %v397_v22  }
  0x44   : > { %668 = vperm.xlu1 %1305, %v430_v23   ;;  %v370_v23 = vld [vmem:[%s1557_s14 + $0x178] sm:$0xff] }
  0x45   : > { %663 = vperm.xlu0 %1304, %v429_v24   ;;  %v369_v24 = vld [vmem:[%s1557_s14 + $0x170] sm:$0xff] }
  0x48   : > { %578 = vperm.xlu1 %1305, %v412_v25  }
  0x49   : > { %573 = vperm.xlu0 %1304, %v411_v26  }
  0x4c   : > { %738 = vperm.xlu1 %1305, %v444_v27  }
  0x4d   : > { %733 = vperm.xlu0 %1304, %v443_v28  }
  0x50   : > { %498 = vperm.xlu1 %1305, %v396_v29  }
  0x51   : > { %493 = vperm.xlu0 %1304, %v395_v30   ;;  %v352_v30 = vld [vmem:[%s1557_s14 + $0xe8] sm:$0xff] }
  0x54   : > { %658 = vperm.xlu1 %1305, %v428_v31   ;;  %v351_v31 = vld [vmem:[%s1557_s14 + $0xe0] sm:$0xff] }
  0x55   : > { %653 = vperm.xlu0 %1304, %v427_v32  }
  0x58   : > { %568 = vperm.xlu1 %1305, %v410_v33  }
  0x59   : > { %563 = vperm.xlu0 %1304, %v409_v34  }
  0x5c   : > { %728 = vperm.xlu1 %1305, %v442_v35  }
  0x5d   : > { %723 = vperm.xlu0 %1304, %v441_v36  }
  0x60   : > { %488 = vperm.xlu1 %1305, %v394_v37   ;;  %v384_v37 = vld [vmem:[%s1557_s14 + $0x1e8] sm:$0xff] }
  0x61   : > { %483 = vperm.xlu0 %1304, %v393_v38   ;;  %v383_v38 = vld [vmem:[%s1557_s14 + $0x1e0] sm:$0xff] }
  0x64   : > { %648 = vperm.xlu1 %1305, %v426_v39  }
  0x65   : > { %643 = vperm.xlu0 %1304, %v425_v40  }
  0x68   : > { %558 = vperm.xlu1 %1305, %v408_v41  }
  0x69   : > { %553 = vperm.xlu0 %1304, %v407_v42  }
  0x6c   : > { %718 = vperm.xlu1 %1305, %v440_v43  }
  0x6d   : > { %713 = vperm.xlu0 %1304, %v439_v44   ;;  %v336_v44 = vld [vmem:[%s1557_s14 + $0x68] sm:$0xff] }
  0x70   : > { %478 = vperm.xlu1 %1305, %v392_v45   ;;  %v335_v45 = vld [vmem:[%s1557_s14 + $0x60] sm:$0xff] }
  0x71   : > { %473 = vperm.xlu0 %1304, %v391_v46  }
  0x74   : > { %638 = vperm.xlu1 %1305, %v424_v47  }
  0x75   : > { %633 = vperm.xlu0 %1304, %v423_v48  }
  0x78   : > { %548 = vperm.xlu1 %1305, %v406_v49  }
  0x79   : > { %543 = vperm.xlu0 %1304, %v405_v50  }
  0x7c   : > { %708 = vperm.xlu1 %1305, %v438_v51   ;;  %v368_v51 = vld [vmem:[%s1557_s14 + $0x168] sm:$0xff] }
  0x7d   : > { %703 = vperm.xlu0 %1304, %v437_v52   ;;  %v367_v52 = vld [vmem:[%s1557_s14 + $0x160] sm:$0xff] }
  0x80   : > { %468 = vperm.xlu1 %1305, %v390_v53  }
  0x81   : > { %463 = vperm.xlu0 %1304, %v389_v54  }
  0x84   : > { %628 = vperm.xlu1 %1305, %v422_v55  }
  0x85   : > { %623 = vperm.xlu0 %1304, %v421_v56  }
  0x88   : > { %538 = vperm.xlu1 %1305, %v404_v57  }
  0x89   : > { %533 = vperm.xlu0 %1304, %v403_v58   ;;  %v350_v58 = vld [vmem:[%s1557_s14 + $0xd8] sm:$0xff] }
  0x8c   : > { %698 = vperm.xlu1 %1305, %v436_v59   ;;  %v349_v59 = vld [vmem:[%s1557_s14 + $0xd0] sm:$0xff] }
  0x8d   : > { %693 = vperm.xlu0 %1304, %v435_v60  }
  0x90   : > { %458 = vperm.xlu1 %1305, %v388_v61  }
  0x91   : > { %453 = vperm.xlu0 %1304, %v387_v62  }
  0x93   : > { %v764_v1 = vpop.permute.xlu1 %763 }
  0x94   : > { %v604_v2 = vpop.permute.xlu0 %603  ;;  %618 = vperm.xlu1 %1305, %v420_v63   ;;  %v833_v9 = vmul.f32 %v764_v1, %v385_v3  ;;  %v382_v1 = vld [vmem:[%s1557_s14 + $0x1d8] sm:$0xff] }
  0x95   : > { %613 = vperm.xlu0 %1304, %v419_v0   ;;  %v801_v12 = vmul.f32 %v604_v2, %v353_v4  ;;  %v381_v2 = vld [vmem:[%s1557_s14 + $0x1d0] sm:$0xff] }
  0x97   : > { %v769_v10 = vpop.permute.xlu1 %768 }
  0x98   : > { %v609_v11 = vpop.permute.xlu0 %608  ;;  %v834_v13 = vmul.f32 %v769_v10, %v386_v5  ;;  %1026 = vperm.xlu1 %1305, %v1024_v7  }
  0x99   : > { %v802_v14 = vmul.f32 %v609_v11, %v354_v6  ;;  %318 = vperm.xlu0 %1304, %v315_v8   ;;  %v334_v8 = vld [vmem:[%s1557_s14 + $0x58] sm:$0xff] }
  0x9a   : > { %v866_v18 = vpack.c.bf16 %v834_v13, %v833_v9  ;;  %v333_v9 = vld [vmem:[%s1557_s14 + $0x50] sm:$0xff] }
  0x9b   : > { %v850_v17 = vpack.c.bf16 %v802_v14, %v801_v12  ;;  %v529_v19 = vpop.permute.xlu1 %528 }
  0x9c   : > { %v524_v20 = vpop.permute.xlu0 %523  ;;  %v786_v21 = vmul.f32 %v529_v19, %v338_v15  ;;  %1230 = vmatprep.subr.bf16.mxu1 %v866_v18  ;;  %v366_v15 = vld [vmem:[%s1557_s14 + $0x158] sm:$0xff] }
  0x9d   : > { %v785_v22 = vmul.f32 %v524_v20, %v337_v16  ;;  %1212 = vmatprep.subr.bf16.mxu0 %v850_v17  ;;  %v365_v16 = vld [vmem:[%s1557_s14 + $0x150] sm:$0xff] }
  0x9f   : > { %v842_v25 = vpack.c.bf16 %v786_v21, %v785_v22  ;;  %v689_v26 = vpop.permute.xlu1 %688  ;;  %v348_v22 = vld [vmem:[%s1557_s14 + $0xc8] sm:$0xff] }
  0xa0   : > { %v684_v27 = vpop.permute.xlu0 %683  ;;  %v818_v28 = vmul.f32 %v689_v26, %v370_v23  ;;  %v347_v23 = vld [vmem:[%s1557_s14 + $0xc0] sm:$0xff] }
  0xa1   : > { %v817_v29 = vmul.f32 %v684_v27, %v369_v24  ;;  %1213 = vmatpush3.bf16.xpose.msra.mxu0 %v842_v25 }
  0xa3   : > { %v858_v32 = vpack.c.bf16 %v818_v28, %v817_v29  ;;  %v599_v33 = vpop.permute.xlu1 %598  ;;  %v380_v29 = vld [vmem:[%s1557_s14 + $0x1c8] sm:$0xff] }
  0xa4   : > { %v594_v34 = vpop.permute.xlu0 %593  ;;  %v800_v35 = vmul.f32 %v599_v33, %v352_v30  ;;  %v379_v30 = vld [vmem:[%s1557_s14 + $0x1c0] sm:$0xff] }
  0xa5   : > { %v799_v36 = vmul.f32 %v594_v34, %v351_v31  ;;  %1231 = vmatpush3.bf16.xpose.msra.mxu1 %v858_v32 }
  0xa7   : > { %v849_v39 = vpack.c.bf16 %v800_v35, %v799_v36  ;;  %v759_v40 = vpop.permute.xlu1 %758  ;;  %v332_v36 = vld [vmem:[%s1557_s14 + $0x48] sm:$0xff] }
  0xa8   : > { %v754_v41 = vpop.permute.xlu0 %753  ;;  %v832_v42 = vmul.f32 %v759_v40, %v384_v37  ;;  %v331_v37 = vld [vmem:[%s1557_s14 + $0x40] sm:$0xff] }
  0xa9   : > { %v831_v43 = vmul.f32 %v754_v41, %v383_v38  ;;  %1214 = vmatprep.subr.bf16.mxu0 %v849_v39 }
  0xab   : > { %v865_v46 = vpack.c.bf16 %v832_v42, %v831_v43  ;;  %v519_v47 = vpop.permute.xlu1 %518  ;;  %v364_v43 = vld [vmem:[%s1557_s14 + $0x148] sm:$0xff] }
  0xac   : > { %v514_v48 = vpop.permute.xlu0 %513  ;;  %v784_v49 = vmul.f32 %v519_v47, %v336_v44  ;;  %v363_v44 = vld [vmem:[%s1557_s14 + $0x140] sm:$0xff] }
  0xad   : > { %v783_v50 = vmul.f32 %v514_v48, %v335_v45  ;;  %1232 = vmatprep.subr.bf16.mxu1 %v865_v46 }
  0xaf   : > { %v841_v53 = vpack.c.bf16 %v784_v49, %v783_v50  ;;  %v679_v54 = vpop.permute.xlu1 %678  ;;  %v346_v50 = vld [vmem:[%s1557_s14 + $0xb8] sm:$0xff] }
  0xb0   : > { %v674_v55 = vpop.permute.xlu0 %673  ;;  %v816_v56 = vmul.f32 %v679_v54, %v368_v51  ;;  %v345_v51 = vld [vmem:[%s1557_s14 + $0xb0] sm:$0xff] }
  0xb1   : > { %v815_v57 = vmul.f32 %v674_v55, %v367_v52  ;;  %1215 = vmatpush3.bf16.xpose.msra.mxu0 %v841_v53 }
  0xb3   : > { %v857_v60 = vpack.c.bf16 %v816_v56, %v815_v57  ;;  %v589_v61 = vpop.permute.xlu1 %588  ;;  %v378_v57 = vld [vmem:[%s1557_s14 + $0x1b8] sm:$0xff] }
  0xb4   : > { %v584_v62 = vpop.permute.xlu0 %583  ;;  %v798_v63 = vmul.f32 %v589_v61, %v350_v58  ;;  %v377_v58 = vld [vmem:[%s1557_s14 + $0x1b0] sm:$0xff] }
  0xb5   : > { %v797_v0 = vmul.f32 %v584_v62, %v349_v59  ;;  %1233 = vmatpush3.bf16.xpose.msra.mxu1 %v857_v60 }
  0xb7   : > { %v848_v3 = vpack.c.bf16 %v798_v63, %v797_v0  ;;  %v749_v4 = vpop.permute.xlu1 %748  ;;  %v330_v0 = vld [vmem:[%s1557_s14 + $0x38] sm:$0xff] }
  0xb8   : > { %v744_v5 = vpop.permute.xlu0 %743  ;;  %v830_v6 = vmul.f32 %v749_v4, %v382_v1  ;;  %v329_v1 = vld [vmem:[%s1557_s14 + $0x30] sm:$0xff] }
  0xb9   : > { %v829_v7 = vmul.f32 %v744_v5, %v381_v2  ;;  %1216 = vmatprep.subr.bf16.mxu0 %v848_v3 }
  0xbb   : > { %v864_v10 = vpack.c.bf16 %v830_v6, %v829_v7  ;;  %v509_v11 = vpop.permute.xlu1 %508  ;;  %v362_v7 = vld [vmem:[%s1557_s14 + $0x138] sm:$0xff] }
  0xbc   : > { %v504_v12 = vpop.permute.xlu0 %503  ;;  %v782_v13 = vmul.f32 %v509_v11, %v334_v8  ;;  %v361_v8 = vld [vmem:[%s1557_s14 + $0x130] sm:$0xff] }
  0xbd   : > { %v781_v14 = vmul.f32 %v504_v12, %v333_v9  ;;  %1234 = vmatprep.subr.bf16.mxu1 %v864_v10 }
  0xbf   : > { %v840_v17 = vpack.c.bf16 %v782_v13, %v781_v14  ;;  %v669_v18 = vpop.permute.xlu1 %668  ;;  %v344_v14 = vld [vmem:[%s1557_s14 + $0xa8] sm:$0xff] }
  0xc0   : > { %v664_v19 = vpop.permute.xlu0 %663  ;;  %v814_v20 = vmul.f32 %v669_v18, %v366_v15  ;;  %v343_v15 = vld [vmem:[%s1557_s14 + $0xa0] sm:$0xff] }
  0xc1   : > { %v813_v21 = vmul.f32 %v664_v19, %v365_v16  ;;  %1217 = vmatpush3.bf16.xpose.msra.mxu0 %v840_v17 }
  0xc3   : > { %v856_v24 = vpack.c.bf16 %v814_v20, %v813_v21  ;;  %v579_v25 = vpop.permute.xlu1 %578  ;;  %v376_v21 = vld [vmem:[%s1557_s14 + $0x1a8] sm:$0xff] }
  0xc4   : > { %v574_v26 = vpop.permute.xlu0 %573  ;;  %v796_v27 = vmul.f32 %v579_v25, %v348_v22  ;;  %v375_v22 = vld [vmem:[%s1557_s14 + $0x1a0] sm:$0xff] }
  0xc5   : > { %v795_v28 = vmul.f32 %v574_v26, %v347_v23  ;;  %1235 = vmatpush3.bf16.xpose.msra.mxu1 %v856_v24 }
  0xc7   : > { %v847_v31 = vpack.c.bf16 %v796_v27, %v795_v28  ;;  %v739_v32 = vpop.permute.xlu1 %738  ;;  %v328_v28 = vld [vmem:[%s1557_s14 + $0x28] sm:$0xff] }
  0xc8   : > { %v734_v33 = vpop.permute.xlu0 %733  ;;  %v828_v34 = vmul.f32 %v739_v32, %v380_v29  ;;  %v327_v29 = vld [vmem:[%s1557_s14 + $0x20] sm:$0xff] }
  0xc9   : > { %v827_v35 = vmul.f32 %v734_v33, %v379_v30  ;;  %1218 = vmatprep.subr.bf16.mxu0 %v847_v31 }
  0xcb   : > { %v863_v38 = vpack.c.bf16 %v828_v34, %v827_v35  ;;  %v499_v39 = vpop.permute.xlu1 %498  ;;  %v360_v35 = vld [vmem:[%s1557_s14 + $0x128] sm:$0xff] }
  0xcc   : > { %v494_v40 = vpop.permute.xlu0 %493  ;;  %v780_v41 = vmul.f32 %v499_v39, %v332_v36  ;;  %v359_v36 = vld [vmem:[%s1557_s14 + $0x120] sm:$0xff] }
  0xcd   : > { %v779_v42 = vmul.f32 %v494_v40, %v331_v37  ;;  %1236 = vmatprep.subr.bf16.mxu1 %v863_v38 }
  0xcf   : > { %v839_v45 = vpack.c.bf16 %v780_v41, %v779_v42  ;;  %v659_v46 = vpop.permute.xlu1 %658  ;;  %v342_v42 = vld [vmem:[%s1557_s14 + $0x98] sm:$0xff] }
  0xd0   : > { %v654_v47 = vpop.permute.xlu0 %653  ;;  %v812_v48 = vmul.f32 %v659_v46, %v364_v43  ;;  %v341_v43 = vld [vmem:[%s1557_s14 + $0x90] sm:$0xff] }
  0xd1   : > { %v811_v49 = vmul.f32 %v654_v47, %v363_v44  ;;  %1219 = vmatpush3.bf16.xpose.msra.mxu0 %v839_v45 }
  0xd3   : > { %v855_v52 = vpack.c.bf16 %v812_v48, %v811_v49  ;;  %v569_v53 = vpop.permute.xlu1 %568  ;;  %v374_v49 = vld [vmem:[%s1557_s14 + $0x198] sm:$0xff] }
  0xd4   : > { %v564_v54 = vpop.permute.xlu0 %563  ;;  %v794_v55 = vmul.f32 %v569_v53, %v346_v50  ;;  %v373_v50 = vld [vmem:[%s1557_s14 + $0x190] sm:$0xff] }
  0xd5   : > { %v793_v56 = vmul.f32 %v564_v54, %v345_v51  ;;  %1237 = vmatpush3.bf16.xpose.msra.mxu1 %v855_v52 }
  0xd7   : > { %v846_v59 = vpack.c.bf16 %v794_v55, %v793_v56  ;;  %v729_v60 = vpop.permute.xlu1 %728  ;;  %v326_v56 = vld [vmem:[%s1557_s14 + $0x18] sm:$0xff] }
  0xd8   : > { %v724_v61 = vpop.permute.xlu0 %723  ;;  %v826_v62 = vmul.f32 %v729_v60, %v378_v57  ;;  %v325_v57 = vld [vmem:[%s1557_s14 + $0x10] sm:$0xff] }
  0xd9   : > { %v825_v63 = vmul.f32 %v724_v61, %v377_v58  ;;  %1220 = vmatprep.subr.bf16.mxu0 %v846_v59 }
  0xdb   : > { %v862_v2 = vpack.c.bf16 %v826_v62, %v825_v63  ;;  %v489_v3 = vpop.permute.xlu1 %488  ;;  %v358_v63 = vld [vmem:[%s1557_s14 + $0x118] sm:$0xff] }
  0xdc   : > { %v484_v4 = vpop.permute.xlu0 %483  ;;  %v778_v5 = vmul.f32 %v489_v3, %v330_v0  ;;  %v357_v0 = vld [vmem:[%s1557_s14 + $0x110] sm:$0xff] }
  0xdd   : > { %v777_v6 = vmul.f32 %v484_v4, %v329_v1  ;;  %1238 = vmatprep.subr.bf16.mxu1 %v862_v2 }
  0xdf   : > { %v838_v9 = vpack.c.bf16 %v778_v5, %v777_v6  ;;  %v649_v10 = vpop.permute.xlu1 %648  ;;  %v340_v6 = vld [vmem:[%s1557_s14 + $0x88] sm:$0xff] }
  0xe0   : > { %v644_v11 = vpop.permute.xlu0 %643  ;;  %v810_v12 = vmul.f32 %v649_v10, %v362_v7  ;;  %v339_v7 = vld [vmem:[%s1557_s14 + $0x80] sm:$0xff] }
  0xe1   : > { %v809_v13 = vmul.f32 %v644_v11, %v361_v8  ;;  %1221 = vmatpush3.bf16.xpose.msra.mxu0 %v838_v9 }
  0xe3   : > { %v854_v16 = vpack.c.bf16 %v810_v12, %v809_v13  ;;  %v559_v17 = vpop.permute.xlu1 %558  ;;  %v372_v13 = vld [vmem:[%s1557_s14 + $0x188] sm:$0xff] }
  0xe4   : > { %v554_v18 = vpop.permute.xlu0 %553  ;;  %v792_v19 = vmul.f32 %v559_v17, %v344_v14  ;;  %v371_v14 = vld [vmem:[%s1557_s14 + $0x180] sm:$0xff] }
  0xe5   : > { %v791_v20 = vmul.f32 %v554_v18, %v343_v15  ;;  %1239 = vmatpush3.bf16.xpose.msra.mxu1 %v854_v16 }
  0xe7   : > { %v845_v23 = vpack.c.bf16 %v792_v19, %v791_v20  ;;  %v719_v24 = vpop.permute.xlu1 %718  ;;  %v324_v20 = vld [vmem:[%s1557_s14 + $0x8] sm:$0xff] }
  0xe8   : > { %v714_v25 = vpop.permute.xlu0 %713  ;;  %v824_v26 = vmul.f32 %v719_v24, %v376_v21  ;;  %v323_v21 = vld [vmem:[%s1557_s14] sm:$0xff] }
  0xe9   : > { %v823_v27 = vmul.f32 %v714_v25, %v375_v22  ;;  %1222 = vmatprep.subr.bf16.mxu0 %v845_v23 }
  0xeb   : > { %v861_v30 = vpack.c.bf16 %v824_v26, %v823_v27  ;;  %v479_v31 = vpop.permute.xlu1 %478  ;;  %v356_v27 = vld [vmem:[%s1557_s14 + $0x108] sm:$0xff] }
  0xec   : > { %v474_v32 = vpop.permute.xlu0 %473  ;;  %v776_v33 = vmul.f32 %v479_v31, %v328_v28  ;;  %v355_v28 = vld [vmem:[%s1557_s14 + $0x100] sm:$0xff]  ;;  %s1045_s14 = scalar_lea.sflag [#allocation3], %s285_s7 }
  0xed   : > { %v775_v34 = vmul.f32 %v474_v32, %v327_v29  ;;  %1240 = vmatprep.subr.bf16.mxu1 %v861_v30 }
  0xef   : > { %v837_v37 = vpack.c.bf16 %v776_v33, %v775_v34  ;;  %v639_v38 = vpop.permute.xlu1 %638 }
  0xf0   : > { %v634_v39 = vpop.permute.xlu0 %633  ;;  %v808_v40 = vmul.f32 %v639_v38, %v360_v35  ;;  %v314_v35 = vld [vmem:[%s1739_s0] sm:$0xff] }
  0xf1   : > { %v807_v41 = vmul.f32 %v634_v39, %v359_v36  ;;  %1223 = vmatpush3.bf16.xpose.msra.mxu0 %v837_v37 }
  0xf3   : > { %v853_v44 = vpack.c.bf16 %v808_v40, %v807_v41  ;;  %v549_v45 = vpop.permute.xlu1 %548 }
  0xf4   : > { %v544_v46 = vpop.permute.xlu0 %543  ;;  %v790_v47 = vmul.f32 %v549_v45, %v342_v42 }
  0xf5   : > { %v789_v48 = vmul.f32 %v544_v46, %v341_v43  ;;  %1241 = vmatpush3.bf16.xpose.msra.mxu1 %v853_v44 }
  0xf7   : > { %v844_v51 = vpack.c.bf16 %v790_v47, %v789_v48  ;;  %v709_v52 = vpop.permute.xlu1 %708 }
  0xf8   : > { %v704_v53 = vpop.permute.xlu0 %703  ;;  %v822_v54 = vmul.f32 %v709_v52, %v374_v49 }
  0xf9   : > { %v821_v55 = vmul.f32 %v704_v53, %v373_v50  ;;  %1224 = vmatprep.subr.bf16.mxu0 %v844_v51  ;;  %v1014_v53 = vlaneseq }
  0xfb   : > { %v860_v58 = vpack.c.bf16 %v822_v54, %v821_v55  ;;  %v469_v59 = vpop.permute.xlu1 %468 }
  0xfc   : > { %v464_v60 = vpop.permute.xlu0 %463  ;;  %v774_v61 = vmul.f32 %v469_v59, %v326_v56 }
  0xfd   : > { %v773_v62 = vmul.f32 %v464_v60, %v325_v57  ;;  %1242 = vmatprep.subr.bf16.mxu1 %v860_v58  ;;  %v1015_v60 = vand.u32 127, %v1014_v53 }
  0xff   : > { %v836_v1 = vpack.c.bf16 %v774_v61, %v773_v62  ;;  %v629_v2 = vpop.permute.xlu1 %628  ;;  %v1017_v61 = vadd.s32 256, %v1015_v60  ;;  %v1019_v62 = vstv %s1205_s29 }
 0x100   : > { %v624_v3 = vpop.permute.xlu0 %623  ;;  %v806_v4 = vmul.f32 %v629_v2, %v358_v63  ;;  %v1016_v63 = vadd.s32 128, %v1015_v60 }
 0x101   : > { %v805_v5 = vmul.f32 %v624_v3, %v357_v0  ;;  %1225 = vmatpush3.bf16.xpose.msra.mxu0 %v836_v1  ;;  %v1018_v0 = vadd.s32 384, %v1015_v60  ;;  %v1020_v1 = vadd.s32 %v1019_v62, %v1015_v60  ;;  %v1022_v2 = vadd.s32 %v1019_v62, %v1017_v61 }
 0x103   : > { %v852_v8 = vpack.c.bf16 %v806_v4, %v805_v5  ;;  %v539_v9 = vpop.permute.xlu1 %538  ;;  %v1655_v4 = vadd.s32 %v1019_v62, %v1016_v63 }
 0x104   : > { %v534_v10 = vpop.permute.xlu0 %533  ;;  %v788_v11 = vmul.f32 %v539_v9, %v340_v6 }
 0x105   : > { %v787_v12 = vmul.f32 %v534_v10, %v339_v7  ;;  %1243 = vmatpush3.bf16.xpose.msra.mxu1 %v852_v8  ;;  %v1658_v7 = vadd.s32 %v1019_v62, %v1018_v0 }
 0x107   : > { %v843_v15 = vpack.c.bf16 %v788_v11, %v787_v12  ;;  %v699_v16 = vpop.permute.xlu1 %698 }
 0x108   : > { %v694_v17 = vpop.permute.xlu0 %693  ;;  %v820_v18 = vmul.f32 %v699_v16, %v372_v13 }
 0x109   : > { %v819_v19 = vmul.f32 %v694_v17, %v371_v14  ;;  %1226 = vmatprep.subr.bf16.mxu0 %v843_v15 }
 0x10b   : > { %v859_v22 = vpack.c.bf16 %v820_v18, %v819_v19  ;;  %v459_v23 = vpop.permute.xlu1 %458 }
 0x10c   : > { %v454_v24 = vpop.permute.xlu0 %453  ;;  %v772_v25 = vmul.f32 %v459_v23, %v324_v20 }
 0x10d   : > { %v771_v26 = vmul.f32 %v454_v24, %v323_v21  ;;  %1244 = vmatprep.subr.bf16.mxu1 %v859_v22 }
 0x10f   : > { %v835_v29 = vpack.c.bf16 %v772_v25, %v771_v26  ;;  %v619_v30 = vpop.permute.xlu1 %618 }
 0x110   : > { %v614_v31 = vpop.permute.xlu0 %613  ;;  %v804_v32 = vmul.f32 %v619_v30, %v356_v27 }
 0x111   : > { %v803_v33 = vmul.f32 %v614_v31, %v355_v28  ;;  %1227 = vmatpush3.bf16.xpose.msra.mxu0 %v835_v29 }
 0x113   : > { %v851_v34 = vpack.c.bf16 %v804_v32, %v803_v33  ;;  %v1653_v3 = vpop.permute.xlu1 %1026 }
 0x114   : > { %v319_v36 = vpop.permute.xlu0 %318  ;;  %vm1028_vm1 = vcmp.eq.s32.totalorder %v1020_v1, %v1653_v3  ;;  %vm1030_vm4 = vcmp.eq.s32.totalorder %v1022_v2, %v1653_v3  ;;  %vm1029_vm13 = vcmp.eq.s32.totalorder %v1655_v4, %v1653_v3  ;;  %vm1031_vm15 = vcmp.eq.s32.totalorder %v1658_v7, %v1653_v3 }
 0x115   : > { %1245 = vmatpush3.bf16.xpose.msra.mxu1 %v851_v34  ;;  %v321_v37 = vmul.f32 %v319_v36, %v314_v35 }
 0x117   : > { %v322_v38 = vpack.c.bf16 %v321_v37, %v321_v37 }
 0x119   : > { %1228 = vmatprep.mubr.bf16.mxu0 %v322_v38  ;;  %1246 = vmatprep.mubr.bf16.mxu1 %v322_v38 }
 0x11a   : > { %1229 = vmatmul.mubr.bf16.vlgmr.msra.gmra.mxu0 %v322_v38 }
 0x11c   : > { %1247 = vmatmul.mubr.bf16.vlgmr.msra.gmra.mxu1 %v322_v38 }
 0x1da   : > { %v1634_v39 = vpop.f32.mrf.mxu0 }
 0x1db   : > { %v949_v40 = vmul.f32 %v1634_v39, %v1634_v39  ;;  %v989_v5 = vmul.f32 0.87758255, %v1634_v39  ;;  %vm1001_vm0 = vcmp.gt.f32.partialorder %v1634_v39, -0.87758255  ;;  %v1201_v8 = vadd.f32 -0.23971277, %v1634_v39 }
 0x1dc   : > { %v1638_v41 = vpop.f32.mrf.mxu1  ;;  %v1640_v42 = vpop.f32.mrf.mxu0 }
 0x1dd   : > { %v951_v43 = vmul.f32 %v1638_v41, %v1638_v41  ;;  %v953_v44 = vsub.f32 1.0, %v949_v40  ;;  %v950_v45 = vmul.f32 %v1640_v42, %v1640_v42  ;;  %v991_v9 = vmul.f32 0.87758255, %v1638_v41 }
 0x1de   : > { %v1646_v46 = vpop.f32.mrf.mxu1  ;;  %v905_v48 = vpop.f32.mrf.mxu0  ;;  %vm1003_vm3 = vcmp.gt.f32.partialorder %v1638_v41, -0.87758255  ;;  %v1203_v12 = vadd.f32 -0.23971277, %v1638_v41  ;;  %v990_v32 = vmul.f32 0.87758255, %v1640_v42 }
 0x1df   : > { %v955_v47 = vsub.f32 1.0, %v951_v43  ;;  %v952_v49 = vmul.f32 %v1646_v46, %v1646_v46  ;;  %v957_v50 = vmax.f32 %v953_v44, 0.0  ;;  %v954_v51 = vsub.f32 1.0, %v950_v45 }
 0x1e0   : > { %v946_v52 = vpop.f32.mrf.mxu1  ;;  %v906_v56 = vpop.f32.mrf.mxu0  ;;  %vm1002_vm12 = vcmp.gt.f32.partialorder %v1640_v42, -0.87758255  ;;  %v992_v37 = vmul.f32 0.87758255, %v1646_v46  ;;  %v1202_v44 = vadd.f32 -0.23971277, %v1640_v42 }
 0x1e1   : > { %v959_v54 = vmax.f32 %v955_v47, 0.0  ;;  %v956_v55 = vsub.f32 1.0, %v952_v49  ;;  %1306 = vrsqrt.f32 %v957_v50  ;;  %v958_v58 = vmax.f32 %v954_v51, 0.0 }
 0x1e2   : > { %v947_v57 = vpop.f32.mrf.mxu1  ;;  %vm963_vm2 = vcmp.eq.f32.partialorder %v957_v50, inf  ;;  %vm965_vm5 = vcmp.eq.f32.partialorder %v957_v50, 0.0  ;;  %v966_v13 = vand.u32 2147483648, %v957_v50  ;;  %vm1004_vm14 = vcmp.gt.f32.partialorder %v1646_v46, -0.87758255 }
 0x1e3   : > { %1308 = vrsqrt.f32 %v959_v54  ;;  %v960_v59 = vmax.f32 %v956_v55, 0.0  ;;  %vm977_vm6 = vcmp.eq.f32.partialorder %v959_v54, inf  ;;  %vm970_vm7 = vcmp.eq.f32.partialorder %v958_v58, inf }
 0x1e4   : > { %1310 = vrsqrt.f32 %v958_v58  ;;  %vm979_vm8 = vcmp.eq.f32.partialorder %v959_v54, 0.0  ;;  %v980_v17 = vand.u32 2147483648, %v959_v54  ;;  %vm972_vm9 = vcmp.eq.f32.partialorder %v958_v58, 0.0 }
 0x1e5   : > { %1312 = vrsqrt.f32 %v960_v59  ;;  %v973_v23 = vand.u32 2147483648, %v958_v58  ;;  %vm984_vm10 = vcmp.eq.f32.partialorder %v960_v59, inf  ;;  %v987_v28 = vand.u32 2147483648, %v960_v59 }
 0x1e6   : > { %vm986_vm11 = vcmp.eq.f32.partialorder %v960_v59, 0.0 }
 0x1ee   : > { %v1307_v6 = vpop.eup %1306 }
 0x1ef   : > { %v962_v11 = vmul.f32 %v1307_v6, %v957_v50 }
 0x1f0   : > { %v1309_v10 = vpop.eup %1308 }
 0x1f1   : > { %v976_v14 = vmul.f32 %v1309_v10, %v959_v54  ;;  %v1311_v15 = vpop.eup %1310  ;;  %v964_v16 = vsel %vm963_vm2, %v957_v50, %v962_v11  ;;  %v1204_v50 = vadd.f32 -0.23971277, %v1646_v46 }
 0x1f2   : > { %v1313_v18 = vpop.eup %1312  ;;  %v967_v19 = vsel %vm965_vm5, %v966_v13, %v964_v16  ;;  %v969_v20 = vmul.f32 %v1311_v15, %v958_v58 }
 0x1f3   : > { %v978_v21 = vsel %vm977_vm6, %v959_v54, %v976_v14  ;;  %v993_v22 = vmul.f32 0.47942555, %v967_v19  ;;  %v983_v25 = vmul.f32 %v1313_v18, %v960_v59 }
 0x1f4   : > { %v981_v24 = vsel %vm979_vm8, %v980_v17, %v978_v21  ;;  %v971_v26 = vsel %vm970_vm7, %v958_v58, %v969_v20 }
 0x1f5   : > { %v995_v27 = vmul.f32 0.47942555, %v981_v24  ;;  %v997_v29 = vsub.f32 %v989_v5, %v993_v22  ;;  %v974_v30 = vsel %vm972_vm9, %v973_v23, %v971_v26  ;;  %v985_v31 = vsel %vm984_vm10, %v960_v59, %v983_v25 }
 0x1f6   : > { %v994_v33 = vmul.f32 0.47942555, %v974_v30  ;;  %v988_v35 = vsel %vm986_vm11, %v987_v28, %v985_v31 }
 0x1f7   : > { %v999_v34 = vsub.f32 %v991_v9, %v995_v27  ;;  %v1009_v36 = vsel %vm1001_vm0, %v997_v29, %v1201_v8  ;;  %v996_v38 = vmul.f32 0.47942555, %v988_v35 }
 0x1f8   : > { %v1032_v40 = vsel %vm1028_vm1, %v1009_v36, %v1634_v39  ;;  %v998_v43 = vsub.f32 %v990_v32, %v994_v33 }
 0x1f9   : > { %v1011_v45 = vsel %vm1003_vm3, %v999_v34, %v1203_v12  ;;  %v1036_v47 = vmul.f32 30.0, %v1032_v40  ;;  %v1000_v49 = vsub.f32 %v992_v37, %v996_v38 }
 0x1fa   : > { %v1034_v48 = vsel %vm1030_vm4, %v1011_v45, %v1638_v41  ;;  %v1010_v51 = vsel %vm1002_vm12, %v998_v43, %v1202_v44 }
 0x1fb   : > { %v1038_v39 = vmul.f32 30.0, %v1034_v48  ;;  %1040 = vst [vmem:[%s287_s9] sm:$0xff] %v1036_v47  ;;  %v1033_v41 = vsel %vm1029_vm13, %v1010_v51, %v1640_v42  ;;  %v1012_v52 = vsel %vm1004_vm14, %v1000_v49, %v1204_v50 }
 0x1fc   : > { %v1037_v53 = vmul.f32 30.0, %v1033_v41  ;;  %v1035_v54 = vsel %vm1031_vm15, %v1012_v52, %v1646_v46 }
 0x1fd   : > { %1042 = vst [vmem:[%s287_s9 + $0x10] sm:$0xff] %v1038_v39  ;;  %v1039_v55 = vmul.f32 30.0, %v1035_v54 }
 0x1fe   : > { %1041 = vst [vmem:[%s287_s9 + $0x8] sm:$0xff] %v1037_v53 }
 0x1ff   : > { %1043 = vst [vmem:[%s287_s9 + $0x18] sm:$0xff] %v1039_v55 }
 0x200   : > { %1327 = shalt.err (!%p1324_p5)
}
 0x201   : > { %s1328_s24 = scalar_lea.hbm %s1696_s13, 512  ;;  %s1332_s29 = scalar_lea.hbm %s1744_s5, 1024 }
 0x202   : > { %p1329_p6 = scmp.ne.s32.totalorder %s1696_s13, %s1328_s24  ;;  %p1333_p10 = scmp.lt.s32.totalorder %s1696_s13, %s1744_s5 }
 0x203   : > { %p1334_p11 = scmp.lt.s32.totalorder %s1332_s29, %s1328_s24 }
 0x204   : > { %p1330_p7 = pnand %p1329_p6, %p1464_p4 }
 0x205   : > { %p1335_p12 = por %p1334_p11, %p1333_p10 }
 0x206   : > { %p1331_p9 = pneg %p1330_p7 }
 0x208   : > { %p1336_p13 = pnand %p1335_p12, %p1331_p9 }
 0x20a   : > { %1339 = shalt.err (!%p1336_p13)
}
 0x20b   : > { %1248 = dma.vmem_to_hbm [thread:$0]  (%p1464_p4), %s1062_s10, 512, %s1696_s13, %s1045_s14  }
 0x20c PF: > { %p1254_p0 = scmp.ge.s32.totalorder %s1390_s23, 2  ;;  %s1073_s9 = sand.u32 1, %s1370_s18  }
 0x20d   : > { %s1074_s11 = scalar_lea.sflag [#allocation3], %s1073_s9 }
 0x20e   : > { %p1251_p1 = pnand %p1254_p0, %p1471_p8 }
 0x210   : > { %p1252_p2 = pneg %p1251_p1 }
 0x212   : > { %1365 = dma.done.wait (%p1252_p2), %s1074_s11, 512  }
 0x213   : > { %1367 = vsyncadd (%p1252_p2), %s1074_s11, 4294966784  ;;  %s18_s23 = sadd.s32 1, %s1390_s23   ;;  %s1747_s18 = smov %s1374_s19 }
 0x214   : > { %p15_p3 = scmp.ge.s32.totalorder %s18_s23, 4   ;;  %s1748_s19 = smov %s1378_s20 }
 0x215   : > { %s1749_s20 = smov %s1477_s6  ;;  %s1750_s21 = smov %s1386_s22 }
 0x216   : > { %s1751_s22 = smov %s1753_s26  ;;  %17 = sbr.rel (!%p15_p3) target bundleno = 4 (0x4), region = 87 }
 0x21b   :  { %1079 = vsyncpa [#allocation3], 1 }
 0x21c   :  { %1081 = vsyncpa [#allocation3 + $0x1], 1 }

</bundles_post_ra>
